<compile_context>
chip_gen: v5e
topology: v5e:2x2
jax: 0.10.0
libtpu: 0.0.40
codegen_flags: <defaults>
</compile_context>

<pallas_src>
import math

import jax
import jax.numpy as jnp
from jax.experimental import pallas as pl
from jax.experimental.pallas import tpu as pltpu


_NEG_BIG = -1e30  # class/pixel padding value (finite; exp() underflows to 0)


def _make_ohem_kernel(threshold_log, ignore_idx, p_real, tp, tiles_per_core):
    """Builds the kernel closed over static config (threshold, sizes)."""

    def kernel(logits_ref, labels_ref, loss_ref, acc_ref):
        core = pl.program_id(0)   # pixel-range split (megacore on v7x)
        j = pl.program_id(1)      # reduction over pixel tiles of this split

        # Initialize this split's resident (8, tp) accumulator once.
        @pl.when(j == 0)
        def _init():
            acc_ref[...] = jnp.zeros_like(acc_ref)

        logits = logits_ref[...].astype(jnp.float32)   # (C_pad, TP)
        labels = labels_ref[...]                       # (1, TP) int32

        # Numerically-stable log-sum-exp over the (sublane) class axis.
        # Padded class rows hold -1e30, so they never win the max and their
        # exp() underflows to 0 -> unmasked, correct reduction.
        m = jnp.max(logits, axis=0, keepdims=True)                        # (1, TP)
        lse = m + jnp.log(jnp.sum(jnp.exp(logits - m), axis=0, keepdims=True))

        # Gather logits[label, pixel] via one-hot select (ignored / padded
        # pixels are zeroed below by the `valid` mask, so any mismatch or
        # accidental match on a padded class row is harmless).
        class_ids = jax.lax.broadcasted_iota(jnp.int32, logits.shape, 0)   # (C_pad, TP)
        picked = jnp.sum(jnp.where(class_ids == labels, logits, 0.0),
                         axis=0, keepdims=True)                            # (1, TP)

        valid = labels != ignore_idx                                       # (1, TP)
        loss = jnp.where(valid, lse - picked, 0.0)                         # (1, TP)
        loss_ref[...] = loss

        # Mask off padded pixels (beyond the real P) for the statistics.
        tile_idx = core * tiles_per_core + j
        col = jax.lax.broadcasted_iota(jnp.int32, loss.shape, 1) + tile_idx * tp
        in_range = col < p_real

        # NOTE: ignored-but-real pixels (loss == 0) intentionally count as
        # "hard" when log(threshold) < 0 -- this mirrors the PyTorch module,
        # which is why the in_range mask cannot be replaced by `valid`.
        hard = jnp.logical_and(loss > threshold_log, in_range)
        acc_ref[0:1, :] += jnp.where(hard, loss, 0.0)                     # hard-sum
        acc_ref[1:2, :] += hard.astype(jnp.float32)                       # hard-count
        acc_ref[2:3, :] += jnp.logical_and(valid, in_range).astype(jnp.float32)

    return kernel


def _choose_tp(c_pad, p_real, tp_cap, vmem_budget_bytes=10 << 20):
    """Pick the largest lane-tile (multiple of 128) that keeps VMEM modest.

    Per-lane-column bytes: logits double-buffered (<=4 B/elt), labels (int32,
    double-buffered), per-pixel loss out (f32, double-buffered), and the
    resident (8, tp) f32 accumulator.  Budget stays well under the scoped-VMEM
    defaults on v5e (16 MiB) and v6e/v7x (32 MiB).
    """
    per_lane = 2 * c_pad * 4 + 2 * 4 + 2 * 4 + 8 * 4
    tp = min(tp_cap, vmem_budget_bytes // per_lane)
    tp = max(128, (tp // 128) * 128)
    p_round = -(-p_real // 128) * 128
    return min(tp, p_round)


def ohem_cross_entropy_2d(logits, labels, threshold, ignore_idx=19,
                          tp_cap=16384):
    """Forward pass equivalent to OhemCrossEntropy2d(threshold, ignore_idx)."""
    n, c, h, w = logits.shape
    assert labels.shape == (n, h, w)
    p_real = n * h * w

    # Sublane-align the class axis (pad with a huge negative constant).
    c_pad = -(-c // 8) * 8

    tp = _choose_tp(c_pad, p_real, tp_cap)
    n_tiles = -(-p_real // tp)
    n_split = 2 if n_tiles >= 2 else 1          # 2 TensorCores on v7x
    tiles_total = -(-n_tiles // n_split) * n_split
    tiles_per_core = tiles_total // n_split
    p_pad = tiles_total * tp

    # NCHW -> (C, P); labels NHW -> (1, P).  Same flattening order as
    # PyTorch's loss.view(-1).
    logits_cp = jnp.transpose(logits, (1, 0, 2, 3)).reshape(c, p_real)
    labels_p = labels.reshape(1, p_real).astype(jnp.int32)
    if (c_pad != c) or (p_pad != p_real):
        logits_cp = jnp.pad(logits_cp, ((0, c_pad - c), (0, p_pad - p_real)),
                            constant_values=_NEG_BIG)
        labels_p = jnp.pad(labels_p, ((0, 0), (0, p_pad - p_real)),
                           constant_values=ignore_idx)

    threshold_log = float(math.log(float(threshold)))
    kernel = _make_ohem_kernel(threshold_log, ignore_idx, p_real, tp,
                               tiles_per_core)

    loss_out, acc = pl.pallas_call(
        kernel,
        out_shape=(
            jax.ShapeDtypeStruct((1, p_pad), jnp.float32),        # per-pixel loss
            jax.ShapeDtypeStruct((n_split, 8, tp), jnp.float32),  # packed stats
        ),
        grid_spec=pltpu.PrefetchScalarGridSpec(
            num_scalar_prefetch=0,
            grid=(n_split, tiles_per_core),
            in_specs=[
                pl.BlockSpec((c_pad, tp),
                             lambda s, j: (0, s * tiles_per_core + j)),
                pl.BlockSpec((1, tp),
                             lambda s, j: (0, s * tiles_per_core + j)),
            ],
            out_specs=[
                pl.BlockSpec((1, tp),
                             lambda s, j: (0, s * tiles_per_core + j)),
                # Resident per-split accumulator (revisited along j).
                pl.BlockSpec((None, 8, tp), lambda s, j: (s, 0, 0)),
            ],
        ),
        compiler_params=pltpu.CompilerParams(
            dimension_semantics=("parallel", "arbitrary")),
    )(logits_cp, labels_p)

    sum_hard = jnp.sum(acc[:, 0, :])
    cnt_hard = jnp.sum(acc[:, 1, :])
    n_min_f = jnp.sum(acc[:, 2, :])               # number of non-ignored pixels
    n_min = n_min_f.astype(jnp.int32)

    # Mean over losses > threshold.  Safe divide: only used when
    # cnt_hard >= n_min, but avoid a NaN leaking through grad/vmap.
    mean_hard = sum_hard / jnp.maximum(cnt_hard, 1.0)

    loss_flat = loss_out[0, :p_real]

    def _topk_mean(loss_vec):
        # Rare fallback: mean of the top-n_min losses.  Runs only when the
        # "not enough hard examples" branch is actually taken (lax.cond),
        # so the O(P log P) sort does not tax the common path.
        # TODO(synk): in-kernel top-k selection (bitonic sort) not implemented.
        srt = jnp.sort(loss_vec)[::-1]
        csum = jnp.cumsum(srt)
        k = jnp.maximum(n_min, 1)
        return jnp.take(csum, k - 1) / k.astype(jnp.float32)

    return jax.lax.cond(cnt_hard < n_min_f, _topk_mean,
                        lambda _: mean_hard, loss_flat)


def _ref_ohem(logits, labels, threshold, ignore_idx):
    """Pure-JAX reference mirroring the PyTorch module."""
    n, c, h, w = logits.shape
    logp = jax.nn.log_softmax(logits, axis=1)
    safe_labels = jnp.clip(labels, 0, c - 1)
    ll = jnp.take_along_axis(logp, safe_labels[:, None], axis=1)[:, 0]
    loss = jnp.where(labels == ignore_idx, 0.0, -ll).reshape(-1)
    n_min = jnp.sum(labels != ignore_idx)
    thr = jnp.log(jnp.float32(threshold))
    hard = loss > thr
    cnt = jnp.sum(hard)
    mean_hard = jnp.sum(jnp.where(hard, loss, 0.0)) / cnt.astype(jnp.float32)
    srt = jnp.sort(loss)[::-1]
    cs = jnp.cumsum(srt)
    k = jnp.maximum(n_min, 1)
    topk_mean = cs[k - 1] / k.astype(jnp.float32)
    return jnp.where(cnt < n_min, topk_mean, mean_hard)


if __name__ == "__main__":
    key = jax.random.PRNGKey(0)
    k1, k2, k3 = jax.random.split(key, 3)

    N, C, H, W = 2, 4, 16, 16
    IGNORE = 19

    logits = jax.random.normal(k1, (N, C, H, W), dtype=jnp.float32) * 2.0
    labels = jax.random.randint(k2, (N, H, W), 0, C, dtype=jnp.int32)
    ignore_mask = jax.random.bernoulli(k3, 0.2, (N, H, W))
    labels = jnp.where(ignore_mask, IGNORE, labels)

    # threshold=0.7 -> log<0 -> "enough hard examples" branch.
    # threshold=5.0 -> log~1.61 -> exercises the top-k fallback branch.
    for thr in (0.7, 5.0):
        ref = _ref_ohem(logits, labels, thr, IGNORE)
        # cap=128 forces the multi-tile / 2-split grid path; the big cap uses
        # a single large lane tile (the production configuration).
        for cap in (128, 16384):
            out = ohem_cross_entropy_2d(logits, labels, thr, IGNORE,
                                        tp_cap=cap)
            out, ref_v = jax.block_until_ready((out, ref))
            assert jnp.allclose(out, ref_v, rtol=1e-4, atol=1e-5), (
                thr, cap, out, ref_v)

    print("KERNEL_OK")
</pallas_src>

<mosaic_0001>
module attributes {stable_mosaic.version = 11 : i64} {
  func.func @kernel(%arg0: i32, %arg1: i32, %arg2: memref<8x128xf32, #tpu.memory_space<vmem>>, %arg3: memref<1x128xi32, #tpu.memory_space<vmem>>, %arg4: memref<1x128xf32, #tpu.memory_space<vmem>>, %arg5: memref<1x8x128xf32, #tpu.memory_space<vmem>>) attributes {dimension_semantics = [#tpu.dimension_semantics<parallel>, #tpu.dimension_semantics<arbitrary>], iteration_bounds = array<i64: 2, 2>, scalar_prefetch = 0 : i64, scratch_operands = 0 : i64, tpu.core_type = #tpu.core_type<tc>, window_params = [{transform_indices = @transform_0, window_bounds = array<i64: 8, 128>}, {transform_indices = @transform_1, window_bounds = array<i64: 1, 128>}, {transform_indices = @transform_2, window_bounds = array<i64: 1, 128>}, {transform_indices = @transform_3, window_bounds = array<i64: 1, 8, 128>}]} {
    %c0_i32 = arith.constant 0 : i32
    %0 = arith.cmpi eq, %arg1, %c0_i32 : i32
    %1 = arith.extui %0 : i1 to i32
    %c0_i32_0 = arith.constant 0 : i32
    %2 = arith.cmpi ne, %1, %c0_i32_0 : i32
    scf.if %2 {
      %cst_28 = arith.constant 0.000000e+00 : f32
      %63 = vector.broadcast %cst_28 : f32 to vector<8x128xf32>
      %c0_29 = arith.constant 0 : index
      %c0_30 = arith.constant 0 : index
      %c0_31 = arith.constant 0 : index
      %64 = vector.load %arg5[%c0_29, %c0_30, %c0_31] : memref<1x8x128xf32, #tpu.memory_space<vmem>>, vector<1x8x128xf32>
      %65 = vector.shape_cast %64 : vector<1x8x128xf32> to vector<8x128xf32>
      %66 = vector.shape_cast %63 : vector<8x128xf32> to vector<1x8x128xf32>
      tpu.vector_store %arg5[%c0_29, %c0_30, %c0_31], %66 {strides = array<i32>} : memref<1x8x128xf32, #tpu.memory_space<vmem>>, vector<1x8x128xf32>,
    } else {
    }
    %c0 = arith.constant 0 : index
    %c0_1 = arith.constant 0 : index
    %3 = vector.load %arg2[%c0, %c0_1] : memref<8x128xf32, #tpu.memory_space<vmem>>, vector<8x128xf32>
    %c0_2 = arith.constant 0 : index
    %c0_3 = arith.constant 0 : index
    %4 = vector.load %arg3[%c0_2, %c0_3] : memref<1x128xi32, #tpu.memory_space<vmem>>, vector<1x128xi32>
    %cst = arith.constant dense<0xFF800000> : vector<128xf32>
    %5 = vector.multi_reduction <maximumf>, %3, %cst [0] : vector<8x128xf32> to vector<128xf32>
    %6 = vector.shape_cast %5 : vector<128xf32> to vector<1x128xf32>
    %7 = vector.broadcast %6 : vector<1x128xf32> to vector<8x128xf32>
    %8 = arith.subf %3, %7 : vector<8x128xf32>
    %9 = math.exp %8 : vector<8x128xf32>
    %cst_4 = arith.constant dense<0.000000e+00> : vector<128xf32>
    %10 = vector.multi_reduction <add>, %9, %cst_4 [0] : vector<8x128xf32> to vector<128xf32>
    %11 = vector.shape_cast %10 : vector<128xf32> to vector<1x128xf32>
    %12 = math.log %11 : vector<1x128xf32>
    %13 = arith.addf %6, %12 : vector<1x128xf32>
    %14 = tpu.iota {dimensions = array<i32: 0>} : vector<8x128xi32>
    %15 = vector.broadcast %4 : vector<1x128xi32> to vector<8x128xi32>
    %16 = arith.cmpi eq, %14, %15 : vector<8x128xi32>
    %cst_5 = arith.constant 0.000000e+00 : f32
    %17 = vector.broadcast %cst_5 : f32 to vector<8x128xf32>
    %18 = arith.select %16, %3, %17 : vector<8x128xi1>, vector<8x128xf32>
    %cst_6 = arith.constant dense<0.000000e+00> : vector<128xf32>
    %19 = vector.multi_reduction <add>, %18, %cst_6 [0] : vector<8x128xf32> to vector<128xf32>
    %20 = vector.shape_cast %19 : vector<128xf32> to vector<1x128xf32>
    %c19_i32 = arith.constant 19 : i32
    %21 = vector.broadcast %c19_i32 : i32 to vector<1x128xi32>
    %22 = arith.cmpi ne, %4, %21 : vector<1x128xi32>
    %23 = arith.subf %13, %20 : vector<1x128xf32>
    %cst_7 = arith.constant 0.000000e+00 : f32
    %24 = vector.broadcast %cst_7 : f32 to vector<1x128xf32>
    %25 = arith.select %22, %23, %24 : vector<1x128xi1>, vector<1x128xf32>
    %c0_8 = arith.constant 0 : index
    %c0_9 = arith.constant 0 : index
    %26 = vector.load %arg4[%c0_8, %c0_9] : memref<1x128xf32, #tpu.memory_space<vmem>>, vector<1x128xf32>
    tpu.vector_store %arg4[%c0_8, %c0_9], %25 {strides = array<i32>} : memref<1x128xf32, #tpu.memory_space<vmem>>, vector<1x128xf32>,
    %c2_i32 = arith.constant 2 : i32
    %27 = arith.muli %arg0, %c2_i32 : i32
    %28 = arith.addi %27, %arg1 : i32
    %29 = tpu.iota {dimensions = array<i32: 1>} : vector<1x128xi32>
    %c128_i32 = arith.constant 128 : i32
    %30 = arith.muli %28, %c128_i32 : i32
    %31 = vector.broadcast %30 : i32 to vector<1x128xi32>
    %32 = arith.addi %29, %31 : vector<1x128xi32>
    %c512_i32 = arith.constant 512 : i32
    %33 = vector.broadcast %c512_i32 : i32 to vector<1x128xi32>
    %34 = arith.cmpi slt, %32, %33 : vector<1x128xi32>
    %cst_10 = arith.constant -0.356674939 : f32
    %35 = vector.broadcast %cst_10 : f32 to vector<1x128xf32>
    %36 = arith.cmpf ogt, %25, %35 : vector<1x128xf32>
    %37 = arith.andi %36, %34 : vector<1x128xi1>
    %c0_11 = arith.constant 0 : index
    %c0_12 = arith.constant 0 : index
    %c0_13 = arith.constant 0 : index
    %38 = vector.load %arg5[%c0_11, %c0_12, %c0_13] : memref<1x8x128xf32, #tpu.memory_space<vmem>>, vector<1x1x128xf32>
    %39 = vector.shape_cast %38 : vector<1x1x128xf32> to vector<1x128xf32>
    %cst_14 = arith.constant 0.000000e+00 : f32
    %40 = vector.broadcast %cst_14 : f32 to vector<1x128xf32>
    %41 = arith.select %37, %25, %40 : vector<1x128xi1>, vector<1x128xf32>
    %42 = arith.addf %39, %41 : vector<1x128xf32>
    %c0_15 = arith.constant 0 : index
    %c0_16 = arith.constant 0 : index
    %c0_17 = arith.constant 0 : index
    %43 = vector.load %arg5[%c0_15, %c0_16, %c0_17] : memref<1x8x128xf32, #tpu.memory_space<vmem>>, vector<1x1x128xf32>
    %44 = vector.shape_cast %43 : vector<1x1x128xf32> to vector<1x128xf32>
    %45 = vector.shape_cast %42 : vector<1x128xf32> to vector<1x1x128xf32>
    tpu.vector_store %arg5[%c0_15, %c0_16, %c0_17], %45 {strides = array<i32>} : memref<1x8x128xf32, #tpu.memory_space<vmem>>, vector<1x1x128xf32>,
    %c0_18 = arith.constant 0 : index
    %c1 = arith.constant 1 : index
    %c0_19 = arith.constant 0 : index
    %46 = vector.load %arg5[%c0_18, %c1, %c0_19] : memref<1x8x128xf32, #tpu.memory_space<vmem>>, vector<1x1x128xf32>
    %47 = vector.shape_cast %46 : vector<1x1x128xf32> to vector<1x128xf32>
    %48 = arith.extui %37 : vector<1x128xi1> to vector<1x128xi32>
    %49 = arith.sitofp %48 : vector<1x128xi32> to vector<1x128xf32>
    %50 = arith.addf %47, %49 : vector<1x128xf32>
    %c0_20 = arith.constant 0 : index
    %c1_21 = arith.constant 1 : index
    %c0_22 = arith.constant 0 : index
    %51 = vector.load %arg5[%c0_20, %c1_21, %c0_22] : memref<1x8x128xf32, #tpu.memory_space<vmem>>, vector<1x1x128xf32>
    %52 = vector.shape_cast %51 : vector<1x1x128xf32> to vector<1x128xf32>
    %53 = vector.shape_cast %50 : vector<1x128xf32> to vector<1x1x128xf32>
    tpu.vector_store %arg5[%c0_20, %c1_21, %c0_22], %53 {strides = array<i32>} : memref<1x8x128xf32, #tpu.memory_space<vmem>>, vector<1x1x128xf32>,
    %c0_23 = arith.constant 0 : index
    %c2 = arith.constant 2 : index
    %c0_24 = arith.constant 0 : index
    %54 = vector.load %arg5[%c0_23, %c2, %c0_24] : memref<1x8x128xf32, #tpu.memory_space<vmem>>, vector<1x1x128xf32>
    %55 = vector.shape_cast %54 : vector<1x1x128xf32> to vector<1x128xf32>
    %56 = arith.andi %22, %34 : vector<1x128xi1>
    %57 = arith.extui %56 : vector<1x128xi1> to vector<1x128xi32>
    %58 = arith.sitofp %57 : vector<1x128xi32> to vector<1x128xf32>
    %59 = arith.addf %55, %58 : vector<1x128xf32>
    %c0_25 = arith.constant 0 : index
    %c2_26 = arith.constant 2 : index
    %c0_27 = arith.constant 0 : index
    %60 = vector.load %arg5[%c0_25, %c2_26, %c0_27] : memref<1x8x128xf32, #tpu.memory_space<vmem>>, vector<1x1x128xf32>
    %61 = vector.shape_cast %60 : vector<1x1x128xf32> to vector<1x128xf32>
    %62 = vector.shape_cast %59 : vector<1x128xf32> to vector<1x1x128xf32>
    tpu.vector_store %arg5[%c0_25, %c2_26, %c0_27], %62 {strides = array<i32>} : memref<1x8x128xf32, #tpu.memory_space<vmem>>, vector<1x1x128xf32>,
    return
  }
  func.func @transform_0(%arg0: i32, %arg1: i32) -> (i32, i32) {
    %c2_i32 = arith.constant 2 : i32
    %0 = arith.muli %arg0, %c2_i32 : i32
    %1 = arith.addi %0, %arg1 : i32
    %c0_i32 = arith.constant 0 : i32
    %c0_i32_0 = arith.constant 0 : i32
    return %c0_i32, %1 : i32, i32
  }
  func.func @transform_1(%arg0: i32, %arg1: i32) -> (i32, i32) {
    %c2_i32 = arith.constant 2 : i32
    %0 = arith.muli %arg0, %c2_i32 : i32
    %1 = arith.addi %0, %arg1 : i32
    %c0_i32 = arith.constant 0 : i32
    %c0_i32_0 = arith.constant 0 : i32
    return %c0_i32, %1 : i32, i32
  }
  func.func @transform_2(%arg0: i32, %arg1: i32) -> (i32, i32) {
    %c2_i32 = arith.constant 2 : i32
    %0 = arith.muli %arg0, %c2_i32 : i32
    %1 = arith.addi %0, %arg1 : i32
    %c0_i32 = arith.constant 0 : i32
    %c0_i32_0 = arith.constant 0 : i32
    return %c0_i32, %1 : i32, i32
  }
  func.func @transform_3(%arg0: i32, %arg1: i32) -> (i32, i32, i32) {
    %c0_i32 = arith.constant 0 : i32
    %c0_i32_0 = arith.constant 0 : i32
    %c0_i32_1 = arith.constant 0 : i32
    return %arg0, %c0_i32, %c0_i32_0 : i32, i32, i32
  }
}

</mosaic_0001>

<bundles_post_ra>
// kernel: tpu_custom_call.1
= control target key start
LH: loop header
LB: loop body
LE: loop exit
PB: predicated region body
PF: predicated region fallthrough
CT: control target
= control target key end

     0   :  { %9 = vsyncpa [#allocation3], 0  ;;  %s1161_s0 = inlined_call_operand.hbm [shape: f32[8,512], index: 0, kind: input, shape index: {}]   ;;  %s1162_s1 = inlined_call_operand.hbm [shape: s32[1,512], index: 1, kind: input, shape index: {}]   ;;  %s1163_s2 = inlined_call_operand.hbm [shape: f32[1,512], index: 2, kind: output, shape index: {0}]   ;;  %s1164_s3 = inlined_call_operand.hbm [shape: f32[2,8,128], index: 3, kind: output, shape index: {1}]  }
   0x1   :  { %11 = vsyncpa [#allocation3 + $0x1], 0 }
   0x2   :  { %12 = vsyncpa [#allocation6], 0 }
   0x3   :  { %14 = vsyncpa [#allocation6 + $0x1], 0 }
   0x4   :  { %15 = vsyncpa [#allocation4], 0 }
   0x5   :  { %17 = vsyncpa [#allocation4 + $0x1], 0 }
   0x6   :  { %18 = vsyncpa [#allocation9], 0 }
   0x7   :  { %20 = vsyncpa [#allocation9 + $0x1], 0  ;;  %s889_s12 = smov 0   ;;  %s891_s13 = smov 0  }
   0x8   :  { %s893_s14 = smov 0   ;;  %s895_s15 = smov 0  }
   0x9   :  { %s897_s16 = smov 0   ;;  %s899_s17 = smov 0  }
   0xa   :  { %s901_s18 = smov 0   ;;  %s903_s19 = smov 0  }
   0xb   :  { %s905_s20 = smov 0   ;;  %s907_s21 = smov 0  }
   0xc   :  { %s909_s22 = smov 0  }
   0xd LB: > { %1173 = sst [smem:[#allocation14_spill]] %s825_s12  ;;  %s501_s23 = sadd.s32 4294967295, %s865_s22   ;;  %s865_s22 = sphi %s909_s22, %s26_s22   ;;  %s861_s21 = sphi %s907_s21, %s1202_s21   ;;  %s857_s20 = sphi %s905_s20, %s1201_s20   ;;  %s853_s19 = sphi %s903_s19, %s1200_s19   ;;  %s849_s18 = sphi %s901_s18, %s1199_s18   ;;  %s845_s17 = sphi %s899_s17, %s1198_s17   ;;  %s841_s16 = sphi %s897_s16, %s1206_s16   ;;  %s837_s15 = sphi %s895_s15, %s1205_s15   ;;  %s833_s14 = sphi %s893_s14, %s1196_s14   ;;  %s829_s13 = sphi %s891_s13, %s1204_s13   ;;  %s825_s12 = sphi %s889_s12, %s1203_s12  }
   0xe   : > { %1174 = sst [smem:[#allocation15_spill]] %s833_s14  ;;  %s502_s24 = sadd.s32 4294967294, %s865_s22  }
   0xf   : > { %1175 = sst [smem:[#allocation16_spill]] %s845_s17  ;;  %s35_s25 = sadd.s32 1, %s857_s20 }
  0x10   : > { %1176 = sst [smem:[#allocation17_spill]] %s857_s20  ;;  %s38_s26 = sadd.s32 1, %s861_s21 }
  0x11   : > { %1177 = sst [smem:[#allocation18_spill]] %s861_s21  ;;  %p36_p0 = scmp.ge.s32.totalorder %s35_s25, 2 }
  0x12   : > { %s503_s27 = sshll.u32 %s861_s21, 1  ;;  %s49_s29 = sadd.s32 1, %s845_s17 }
  0x13   : > { %s950_s28 = sadd.s32 %s857_s20, %s503_s27  ;;  %s1208_s25 = smov (%p36_p0, %s35_s25), 0 }
  0x14   : > { %1178 = sst [smem:[#allocation19_spill]] %s1208_s25  ;;  %s1210_s26 = smov (!%p36_p0, %s38_s26), %s861_s21 }
  0x15   : > { %p56_p1 = scmp.ne.s32.totalorder %s845_s17, %s841_s16  ;;  %p57_p2 = scmp.eq.s32.totalorder %s865_s22, 0 }
  0x16   : > { %p40_p3 = scmp.ge.s32.totalorder %s1210_s26, 2  ;;  %p62_p4 = scmp.ne.s32.totalorder %s841_s16, %s837_s15 }
  0x17   : > { %p961_p5 = por %p57_p2, %p56_p1  ;;  %p63_p6 = scmp.eq.s32.totalorder %s501_s23, 0 }
  0x18   : > { %s1212_s26 = smov (%p40_p3, %s1210_s26), 0  ;;  %p971_p8 = scmp.eq.s32.totalorder %s501_s23, 3 }
  0x19   : > { %1180 = sst [smem:[#allocation20_spill]] %s1212_s26  ;;  %p967_p7 = por %p63_p6, %p62_p4 }
  0x1a   : > { %s504_s6 = sshll.u32 %s1212_s26, 1  ;;  %p976_p9 = scmp.eq.s32.totalorder %s502_s24, 3 }
  0x1b   : > { %s45_s8 = sadd.s32 %s504_s6, %s1208_s25  ;;  %p983_p10 = por %p971_p8, %p56_p1 }
  0x1c   : > { %s46_s10 = ssub.s32 %s950_s28, %s45_s8  ;;  %p990_p11 = por %p976_p9, %p62_p4 }
  0x1d   : > { %p47_p12 = scmp.eq.s32.totalorder %s46_s10, 0  ;;  %s132_s23 = ssub.s32 %s861_s21, %s1212_s26 }
  0x1e   : > { %p133_p13 = scmp.eq.s32.totalorder %s132_s23, 0  ;;  %s135_s24 = sadd.s32 1, %s833_s14 }
  0x1f   : > { %s998_s27 = scalar_select %p47_p12, %s845_s17, %s49_s29  }
  0x20   : > { %s1001_s6 = scalar_select %p133_p13, %s833_s14, %s135_s24  }
  0x21   : > { %1186 = sst [smem:[#allocation21_spill]] %s998_s27  ;;  %p145_p0 = scmp.ne.s32.totalorder %s833_s14, %s829_s13 }
  0x22   : > { %1187 = sst [smem:[#allocation22_spill]] %s1001_s6  ;;  %p151_p1 = scmp.ne.s32.totalorder %s829_s13, %s825_s12 }
  0x23   : > { %p550_p2 = scmp.lt.s32.totalorder %s865_s22, 4  ;;  %p1010_p3 = por %p145_p0, %p971_p8 }
  0x24   : > { %p1016_p4 = por %p151_p1, %p976_p9  ;;  %s172_s29 = sand.u32 1, %s845_s17  }
  0x25   : > { %s513_s23 = sshll.u32 %s950_s28, 3  ;;  %s511_s24 = sshll.u32 %s172_s29, 3 }
  0x26   : > { %s1189_s10 = scalar_select %p1016_p4, 1, 0 }
  0x27   : > { %s182_s21 = scalar_lea.hbm %s1161_s0, %s513_s23  ;;  %s176_s27 = scalar_lea.vmem [#allocation2], %s511_s24 }
  0x28   : > { %1190 = sst [smem:[#allocation23_spill]] %s1189_s10  ;;  %s184_s20 = sshll.u32 %s182_s21, 4  ;;  %s185_s20 = int_to_ptr.hbm [resolvable:$true] %s184_s20 }
  0x29   : > { %s186_s5 = sshll.u32 %s176_s27, 4  ;;  %p537_p6 = pnand %p550_p2, %p961_p5  ;;  %s187_s5 = int_to_ptr.vmem [resolvable:$true] %s186_s5 }
  0x2a   : > { %p515_p8 = scmp.ge.s32.totalorder %s865_s22, 1  ;;  %p210_p9 = scmp.lt.s32.totalorder %s865_s22, 5 }
  0x2b   : > { %s173_s7 = scalar_lea.sflag [#allocation3], %s172_s29  ;;  %s201_s14 = scalar_lea.hbm %s1162_s1, %s950_s28 }
  0x2c   : > { %539 = dma.hbm_to_vmem [thread:$0]  (!%p537_p6), %s185_s20, 128, %s187_s5, %s173_s7  }
  0x2d   : > { %p211_p12 = pnand %p515_p8, %p210_p9  ;;  %s203_s10 = sshll.u32 %s201_s14, 4  ;;  %s204_s10 = int_to_ptr.hbm [resolvable:$true] %s203_s10 }
  0x2e   : > { %s196_s12 = scalar_lea.vmem [#allocation5], %s172_s29  ;;  %s194_s21 = scalar_lea.sflag [#allocation6], %s172_s29 }
  0x2f   : > { %s205_s25 = sshll.u32 %s196_s12, 4  ;;  %214 = sbr.rel (%p211_p12) target bundleno = 136 (0x88), region = 28  ;;  %s206_s25 = int_to_ptr.vmem [resolvable:$true] %s205_s25 }
  0x30   : > { %542 = dma.hbm_to_vmem [thread:$0]  (!%p537_p6), %s204_s10, 16, %s206_s25, %s194_s21  }
  0x31   : > { %s1034_s26 = sand.u32 (!%p211_p12), 1, %s841_s16  }
  0x32   : > { %s516_s20 = sshll.u32 (!%p211_p12), %s1034_s26, 3  ;;  %s217_s30 = scalar_lea.sflag (!%p211_p12), [#allocation3], %s1034_s26 }
  0x33   : > { %s220_s27 = scalar_lea.vmem (!%p211_p12), [#allocation2], %s516_s20 }
  0x34   : > { %808 = dma.done.wait (%p967_p7), %s217_s30, 128  }
  0x35   : > { %810 = vsyncadd (%p967_p7), %s217_s30, 4294967168  ;;  %s227_s12 = scalar_lea.sflag [#allocation6], %s1034_s26  ;;  %s229_s14 = scalar_lea.vmem [#allocation5], %s1034_s26 }
  0x36   : > { %812 = dma.done.wait (%p967_p7), %s227_s12, 16  }
  0x37   : > { %814 = vsyncadd (%p967_p7), %s227_s12, 4294967280  ;;  %s258_s17 = sand.u32 1, %s829_s13   ;;  %s253_s6 = scalar_lea.vmem [#allocation7], %s1034_s26 }
  0x38   : > { %s517_s28 = sshll.u32 %s258_s17, 3  ;;  %p518_p5 = scmp.ne.s32.totalorder %s849_s18, 0 }
  0x39   : > { %s1052_s10 = scalar_lea.vmem [#allocation8], %s517_s28 }
  0x3a   : > { %270 = sbr.rel (%p518_p5) target bundleno = 65 (0x41), region = 40 }
  0x3f   : > { %v867_v0 = vmov 0.0  }
  0x40   : > { %271 = vst [vmem:[%s1052_s10] sm:$0xff] %v867_v0 }
  0x41 PF: > { %v272_v1 = vld [vmem:[%s220_s27] sm:$0xff]  ;;  %s519_s4 = sshll.u32 %s853_s19, 1  ;;  %v292_v7 = vlaneseq  ;;  %v868_v19 = vmov 0.0   ;;  %s525_s7 = sshll.u32 %s853_s19, 3 }
  0x42   : > { %v274_v2 = vrot.slane %v272_v1, 4  ;;  %s1058_s29 = sadd.s32 %s849_s18, %s519_s4  ;;  %v642_v11 = vld [vmem:[%s229_s14] ss:$0 sm:$0xff]  ;;  %s1072_s25 = sshll.u32 %s253_s6, 4  ;;  %s351_s25 = int_to_ptr.vmem [resolvable:$true] %s1072_s25 }
  0x43   : > { %s520_s23 = sshll.u32 %s1058_s29, 7  ;;  %v293_v10 = vshrl.u32 %v292_v7, 7  ;;  %v310_v12 = vand.u32 127, %v292_v7  ;;  %v273_v15 = vld [vmem:[%s229_s14] sm:$0x1]  ;;  %s348_s5 = scalar_lea.hbm %s1163_s2, %s1058_s29 }
  0x44   : > { %v275_v3 = vmax.f32 %v272_v1, %v274_v2  ;;  %v312_v14 = vstv %s520_s23  ;;  %vm303_vm2 = vcmp.ne.s32.totalorder %v273_v15, 19  ;;  %s352_s21 = sshll.u32 %s348_s5, 4  ;;  %s1077_s27 = scalar_lea.hbm %s1164_s3, %s525_s7  ;;  %s353_s21 = int_to_ptr.hbm [resolvable:$true] %s352_s21 }
  0x45   : > { %v313_v16 = vadd.s32 %v312_v14, %v310_v12  ;;  %vm295_vm0 = vcmp.eq.s32.totalorder %v293_v10, %v642_v11  ;;  %s364_s19 = sshll.u32 %s1052_s10, 4  ;;  %s366_s12 = sshll.u32 %s1077_s27, 4  ;;  %s365_s19 = int_to_ptr.vmem [resolvable:$true] %s364_s19  ;;  %s367_s12 = int_to_ptr.hbm [resolvable:$true] %s366_s12 }
  0x46   : > { %v276_v4 = vrot.slane %v275_v3, 2  ;;  %v296_v17 = vsel %vm295_vm0, %v272_v1, 0.0  ;;  %s333_s14 = scalar_lea.sflag [#allocation4], %s1034_s26  ;;  %s721_s28 = sshra.s32 %s353_s21, 4  ;;  %s722_s28 = int_to_ptr.hbm [resolvable:$true] %s721_s28 }
  0x47   : > { %vm314_vm1 = vcmp.lt.s32.totalorder %v313_v16, 512  ;;  %v326_v18 = vld [vmem:[%s1052_s10 + $0x2] sm:$0x1]  ;;  %v297_v23 = vrot.slane %v296_v17, 4  ;;  %v317_v40 = vld [vmem:[%s1052_s10] sm:$0x1]  ;;  %p728_p1 = scmp.lt.s32.totalorder %s722_s28, %s1163_s2 }
  0x48   : > { %v277_v5 = vmax.f32 %v275_v3, %v276_v4  ;;  %vm327_vm3 = vmand %vm303_vm2, %vm314_vm1  ;;  %v321_v41 = vld [vmem:[%s1052_s10 + $0x1] sm:$0x1]  ;;  %s723_s4 = scalar_lea.hbm %s722_s28, 1 }
  0x49   : > { %v522_v20 = vsel %vm327_vm3, 1.0, %v868_v19  ;;  %v298_v26 = vadd.f32 %v297_v23, %v296_v17  ;;  %p724_p7 = scmp.ne.s32.totalorder %s722_s28, %s723_s4 }
  0x4a   : > { %v278_v6 = vrot.slane %v277_v5, 1  ;;  %v330_v21 = vadd.f32 %v522_v20, %v326_v18 }
  0x4b   : > { %v299_v29 = vrot.slane %v298_v26, 2  ;;  %p725_p13 = pnand %p724_p7, %p983_p10 }
  0x4c   : > { %v279_v8 = vmax.f32 %v277_v5, %v278_v6  ;;  %331 = vst [vmem:[%s1052_s10 + $0x2] sm:$0x1] %v330_v21 }
  0x4d   : > { %v300_v32 = vadd.f32 %v299_v29, %v298_v26  ;;  %p726_p0 = pneg %p725_p13 }
  0x4e   : > { %v280_v9 = vsub.f32 %v272_v1, %v279_v8 }
  0x4f   : > { %v301_v33 = vrot.slane %v300_v32, 1 }
  0x50   : > { %v281_v13 = vmul.f32 1.442695, %v280_v9 }
  0x51   : > { %v302_v36 = vadd.f32 %v301_v33, %v300_v32 }
  0x52   : > { %643 = vpow2.f32 %v281_v13 }
  0x58   : > { %v644_v22 = vpop.eup %643 }
  0x59   : > { %v283_v24 = vrot.slane %v644_v22, 4 }
  0x5b   : > { %v284_v25 = vadd.f32 %v644_v22, %v283_v24 }
  0x5d   : > { %v285_v27 = vrot.slane %v284_v25, 2 }
  0x5f   : > { %v286_v28 = vadd.f32 %v285_v27, %v284_v25 }
  0x61   : > { %v287_v30 = vrot.slane %v286_v28, 1 }
  0x63   : > { %v288_v31 = vadd.f32 %v287_v30, %v286_v28 }
  0x65   : > { %645 = vlog2.f32 %v288_v31 }
  0x6b   : > { %v646_v34 = vpop.eup %645 }
  0x6c   : > { %v290_v35 = vmul.f32 0.6931472, %v646_v34 }
  0x6e   : > { %v291_v37 = vadd.f32 %v290_v35, %v279_v8 }
  0x70   : > { %v304_v38 = vsub.f32 %v291_v37, %v302_v36 }
  0x72   : > { %v305_v39 = vsel %vm303_vm2, %v304_v38, 0.0 }
  0x73   : > { %306 = vst [vmem:[%s253_s6] sm:$0x1] %v305_v39  ;;  %vm315_vm4 = vcmp.gt.f32.partialorder %v305_v39, -0.35667494  ;;  %s727_s6 = scalar_lea.hbm %s1163_s2, 4 }
  0x74   : > { %vm1088_vm5 = vmand %vm315_vm4, %vm314_vm1  ;;  %p729_p2 = scmp.lt.s32.totalorder %s727_s6, %s723_s4 }
  0x76   : > { %p730_p6 = por %p729_p2, %p728_p1 }
  0x78   : > { %p731_p8 = pnand %p730_p6, %p726_p0 }
  0x7a   : > { %734 = shalt.err (!%p731_p8)
}
  0x7b   : > { %532 = dma.vmem_to_hbm [thread:$0]  (%p983_p10), %s351_s25, 16, %s353_s21, %s333_s14   ;;  %v318_v43 = vsel %vm1088_vm5, %v305_v39, 0.0  ;;  %v521_v44 = vsel %vm1088_vm5, 1.0, %v868_v19 }
  0x7c   : > { %v319_v45 = vadd.f32 %v318_v43, %v317_v40  ;;  %v324_v46 = vadd.f32 %v521_v44, %v321_v41  ;;  %s337_s26 = scalar_lea.sflag [#allocation9], %s258_s17  ;;  %s749_s9 = sshra.s32 %s367_s12, 4  ;;  %s750_s9 = int_to_ptr.hbm [resolvable:$true] %s749_s9 }
  0x7d   : > { %s751_s5 = scalar_lea.hbm %s750_s9, 8  ;;  %s755_s21 = scalar_lea.hbm %s1164_s3, 16 }
  0x7e   : > { %320 = vst [vmem:[%s1052_s10] sm:$0x1] %v319_v45  ;;  %p752_p9 = scmp.ne.s32.totalorder %s750_s9, %s751_s5  ;;  %p756_p5 = scmp.lt.s32.totalorder %s750_s9, %s1164_s3 }
  0x7f   : > { %325 = vst [vmem:[%s1052_s10 + $0x1] sm:$0x1] %v324_v46  ;;  %p757_p7 = scmp.lt.s32.totalorder %s755_s21, %s751_s5 }
  0x80   : > { %p753_p10 = pnand %p752_p9, %p1010_p3 }
  0x81   : > { %p758_p13 = por %p757_p7, %p756_p5 }
  0x82   : > { %p754_p12 = pneg %p753_p10 }
  0x84   : > { %p759_p0 = pnand %p758_p13, %p754_p12 }
  0x86   : > { %762 = shalt.err (!%p759_p0)
}
  0x87   : > { %533 = dma.vmem_to_hbm [thread:$0]  (%p1010_p3), %s365_s19, 128, %s367_s12, %s337_s26  }
  0x88 PF: > { %p551_p1 = scmp.ge.s32.totalorder %s865_s22, 2  ;;  %s378_s17 = sand.u32 1, %s837_s15  }
  0x89   : > { %s379_s10 = scalar_lea.sflag [#allocation4], %s378_s17 }
  0x8a   : > { %p544_p2 = pnand %p551_p1, %p990_p11 }
  0x8c   : > { %p545_p6 = pneg %p544_p2 }
  0x8e   : > { %816 = dma.done.wait (%p545_p6), %s379_s10, 16  }
  0x8f   : > { %818 = vsyncadd (%p545_p6), %s379_s10, 4294967280  ;;  %s1193_s27 = sld [smem:[#allocation14_spill]]  ;;  %p547_p8 = pnand %p551_p1, %p1016_p4 }
  0x91   : > { %p548_p9 = pneg %p547_p8 }
  0x95   : > { %s387_s28 = sand.u32 1, %s1193_s27  }
  0x96   : > { %s388_s8 = scalar_lea.sflag [#allocation9], %s387_s28 }
  0x97   : > { %820 = dma.done.wait (%p548_p9), %s388_s8, 128  }
  0x98   : > { %822 = vsyncadd (%p548_p9), %s388_s8, 4294967168  ;;  %s26_s22 = sadd.s32 1, %s865_s22   ;;  %s1195_s15 = sld [smem:[#allocation15_spill]] }
  0x99   : > { %p23_p3 = scmp.ge.s32.totalorder %s26_s22, 6   ;;  %s1196_s14 = sld [smem:[#allocation22_spill]] }
  0x9a   : > { %s1197_s11 = sld [smem:[#allocation16_spill]]  ;;  %s1203_s12 = smov %s829_s13 }
  0x9b   : > { %s1198_s17 = sld [smem:[#allocation21_spill]] }
  0x9c   : > { %s1199_s18 = sld [smem:[#allocation17_spill]]  ;;  %25 = sbr.rel (!%p23_p3) target bundleno = 13 (0xd), region = 107 }
  0x9d   : > { %s1200_s19 = sld [smem:[#allocation18_spill]] }
  0x9e   : > { %s1201_s20 = sld [smem:[#allocation19_spill]]  ;;  %s1204_s13 = smov %s1195_s15 }
  0x9f   : > { %s1202_s21 = sld [smem:[#allocation20_spill]]  ;;  %s1205_s15 = smov %s841_s16 }
  0xa0   : > { %s1206_s16 = smov %s1197_s11 }
  0xa1   :  { %394 = vsyncpa [#allocation3], 1 }
  0xa2   :  { %396 = vsyncpa [#allocation3 + $0x1], 1 }
  0xa3   :  { %397 = vsyncpa [#allocation6], 1 }
  0xa4   :  { %399 = vsyncpa [#allocation6 + $0x1], 1 }
  0xa5   :  { %400 = vsyncpa [#allocation4], 1 }
  0xa6   :  { %402 = vsyncpa [#allocation4 + $0x1], 1 }
  0xa7   :  { %403 = vsyncpa [#allocation9], 1 }
  0xa8   :  { %405 = vsyncpa [#allocation9 + $0x1], 1 }

</bundles_post_ra>
